<compile_context>
chip_gen: v6e
topology: v6e:2x2x1
jax: 0.10.0
libtpu: 0.0.40
codegen_flags: <defaults>
</compile_context>

<pallas_src>
import functools

import jax
import jax.numpy as jnp
from jax.experimental import pallas as pl
from jax.experimental.pallas import tpu as pltpu


# ----------------------------------------------------------------------------
# Kernel: 3 MXU matmuls over concatenated / block-diagonal actor+critic weights.
# Output slab (f32): [mean | std_raw | value | zero-pad] = 128 lanes.
# ----------------------------------------------------------------------------
def _ppo_fused_kernel(x_ref, w1_ref, b1_ref, w2_ref, b2_ref, w3_ref, b3_ref,
                      out_ref):
    cdt = w1_ref.dtype                      # compute dtype fed to the MXU

    x = x_ref[...]                          # [TB, S] (compute dtype)

    # layer 1 (actor|critic concatenated, 256 wide); f32 accumulate + f32 bias/ReLU
    h = jnp.dot(x, w1_ref[...], preferred_element_type=jnp.float32) + b1_ref[...]
    h = jnp.maximum(h, 0.0)

    # layer 2 (block-diagonal, 128 wide)
    h = jnp.dot(h.astype(cdt), w2_ref[...],
                preferred_element_type=jnp.float32) + b2_ref[...]
    h = jnp.maximum(h, 0.0)

    # layer 3 (block-diagonal, lane-padded to 128)
    y = jnp.dot(h.astype(cdt), w3_ref[...],
                preferred_element_type=jnp.float32) + b3_ref[...]

    out_ref[...] = y                        # unmasked lane-dense f32 store


# ----------------------------------------------------------------------------
# Host-side weight fusion (done once, outside the kernel).
# Weights cast to `dtype` (bf16 by default); biases stay f32.
# ----------------------------------------------------------------------------
def fuse_params(params, action_dim, out_pad=128, dtype=jnp.bfloat16):
    h1 = params["aw1"].shape[1]          # 128
    h2 = params["aw2"].shape[1]          # 64
    a2 = 2 * action_dim

    w1 = jnp.concatenate([params["aw1"], params["cw1"]], axis=1)       # [S, 2*h1]
    b1 = jnp.concatenate([params["ab1"], params["cb1"]], axis=1)       # [1, 2*h1]

    w2 = jnp.zeros((2 * h1, 2 * h2), jnp.float32)
    w2 = w2.at[:h1, :h2].set(params["aw2"])
    w2 = w2.at[h1:, h2:].set(params["cw2"])                            # [2*h1, 2*h2]
    b2 = jnp.concatenate([params["ab2"], params["cb2"]], axis=1)       # [1, 2*h2]

    w3 = jnp.zeros((2 * h2, out_pad), jnp.float32)
    w3 = w3.at[:h2, :a2].set(params["aw3"])
    w3 = w3.at[h2:, a2:a2 + 1].set(params["cw3"])                      # [2*h2, out_pad]
    b3 = jnp.zeros((1, out_pad), jnp.float32)
    b3 = b3.at[:, :a2].set(params["ab3"])
    b3 = b3.at[:, a2:a2 + 1].set(params["cb3"])                        # [1, out_pad]

    return dict(w1=w1.astype(dtype), b1=b1.astype(jnp.float32),
                w2=w2.astype(dtype), b2=b2.astype(jnp.float32),
                w3=w3.astype(dtype), b3=b3.astype(jnp.float32))


# ----------------------------------------------------------------------------
# Batch-tile picker.
#   * Biggest clean divisor up to 4096 rows (per-grid-step overhead ~0.35 us;
#     a 4096x144 f32 working set is far below scoped VMEM, no limit bump needed).
#   * Megacore split: if we'd end up with a single block but B >= 16 and B/2 is
#     sublane-aligned, use two balanced blocks so both v7x TensorCores work.
#   * If nothing divides B we fall back to one block covering B (correct; only
#     disables megacore sharding on v7x).
# ----------------------------------------------------------------------------
def _pick_batch_tile(B):
    tb = B
    for cand in (4096, 2048, 1024, 512, 256, 128, 64, 32, 16, 8):
        if B % cand == 0:
            tb = cand
            break
    if tb == B and B >= 16 and (B // 2) % 8 == 0:
        tb = B // 2
    return tb


# ----------------------------------------------------------------------------
# Wrapper
# ----------------------------------------------------------------------------
def ppo_network_forward(state, fused, action_dim, compute_dtype=jnp.bfloat16):
    """state: [B, state_dim] f32. fused: dict from fuse_params(dtype=compute_dtype).
    Returns (mean [B,A], std [B,A], value [B,1]), all f32."""
    B, S = state.shape
    n1 = fused["w1"].shape[1]            # 256
    n2 = fused["w2"].shape[1]            # 128
    out_pad = fused["w3"].shape[1]       # 128 (lane-dense output width)

    x = state.astype(compute_dtype)
    itm = jnp.dtype(compute_dtype).itemsize

    TB = _pick_batch_tile(B)
    grid = (B // TB,)

    cost = pl.CostEstimate(
        flops=2 * B * (S * n1 + n1 * n2 + n2 * out_pad),
        transcendentals=0,
        bytes_accessed=(itm * (B * S + S * n1 + n1 * n2 + n2 * out_pad)
                        + 4 * (n1 + n2 + out_pad + B * out_pad)),
    )

    # Weights/biases: constant block index -> single-buffer (no wasted VMEM /
    # pipeline bookkeeping).
    resident = dict(pipeline_mode=pl.Buffered(1))

    slab = pl.pallas_call(
        _ppo_fused_kernel,
        out_shape=jax.ShapeDtypeStruct((B, out_pad), jnp.float32),
        grid_spec=pltpu.PrefetchScalarGridSpec(
            num_scalar_prefetch=0,
            grid=grid,
            in_specs=[
                pl.BlockSpec((TB, S), lambda i: (i, 0)),                      # state tile
                pl.BlockSpec((S, n1), lambda i: (0, 0), **resident),          # fused W1
                pl.BlockSpec((1, n1), lambda i: (0, 0), **resident),          # fused b1
                pl.BlockSpec((n1, n2), lambda i: (0, 0), **resident),         # fused W2
                pl.BlockSpec((1, n2), lambda i: (0, 0), **resident),          # fused b2
                pl.BlockSpec((n2, out_pad), lambda i: (0, 0), **resident),    # fused W3
                pl.BlockSpec((1, out_pad), lambda i: (0, 0), **resident),     # fused b3
            ],
            out_specs=pl.BlockSpec((TB, out_pad), lambda i: (i, 0)),
        ),
        compiler_params=pltpu.CompilerParams(
            dimension_semantics=("parallel",),       # shards batch blocks on v7x 2-TC
        ),
        cost_estimate=cost,
    )(x, fused["w1"], fused["b1"], fused["w2"], fused["b2"],
      fused["w3"], fused["b3"])

    # Slice the lane-dense slab apart outside the kernel; softplus only on the
    # [B, A] std slice (tiny fused XLA op, keeps the EUP out of the kernel).
    mean = slab[:, :action_dim]
    std = jax.nn.softplus(slab[:, action_dim:2 * action_dim]) + 1e-05
    value = slab[:, 2 * action_dim:2 * action_dim + 1]
    return mean, std, value


# ----------------------------------------------------------------------------
# Params init (mimics nn.Linear's U(-1/sqrt(fan_in), 1/sqrt(fan_in)))
# Weights stored as [in, out] (transposed vs. PyTorch's [out, in]).
# ----------------------------------------------------------------------------
def init_params(key, state_dim, action_dim):
    def linear(key, fan_in, fan_out):
        kw, kb = jax.random.split(key)
        bound = 1.0 / jnp.sqrt(float(fan_in))
        w = jax.random.uniform(kw, (fan_in, fan_out), jnp.float32, -bound, bound)
        b = jax.random.uniform(kb, (1, fan_out), jnp.float32, -bound, bound)
        return w, b

    keys = jax.random.split(key, 6)
    aw1, ab1 = linear(keys[0], state_dim, 128)
    aw2, ab2 = linear(keys[1], 128, 64)
    aw3, ab3 = linear(keys[2], 64, action_dim * 2)
    cw1, cb1 = linear(keys[3], state_dim, 128)
    cw2, cb2 = linear(keys[4], 128, 64)
    cw3, cb3 = linear(keys[5], 64, 1)
    return dict(
        aw1=aw1, ab1=ab1, aw2=aw2, ab2=ab2, aw3=aw3, ab3=ab3,
        cw1=cw1, cb1=cb1, cw2=cw2, cb2=cb2, cw3=cw3, cb3=cb3,
    )


def ppo_network_reference(state, params):
    """Pure-JAX f32 reference of the PyTorch forward (un-fused weights)."""
    h = jnp.maximum(state @ params["aw1"] + params["ab1"], 0.0)
    h = jnp.maximum(h @ params["aw2"] + params["ab2"], 0.0)
    actor_out = h @ params["aw3"] + params["ab3"]
    act = actor_out.shape[-1] // 2
    mean = actor_out[:, :act]
    std = jax.nn.softplus(actor_out[:, act:]) + 1e-05
    v = jnp.maximum(state @ params["cw1"] + params["cb1"], 0.0)
    v = jnp.maximum(v @ params["cw2"] + params["cb2"], 0.0)
    value = v @ params["cw3"] + params["cb3"]
    return mean, std, value


if __name__ == "__main__":
    B, STATE_DIM, ACTION_DIM = 8, 16, 4

    key = jax.random.PRNGKey(0)
    k_state, k_state2, k_params = jax.random.split(key, 3)

    state = jax.random.normal(k_state, (B, STATE_DIM), jnp.float32)
    params = init_params(k_params, STATE_DIM, ACTION_DIM)

    fwd = jax.jit(ppo_network_forward, static_argnums=(2, 3))

    # ---- f32 path: exact parity with the PyTorch forward (tight tolerance) ----
    fused_f32 = fuse_params(params, ACTION_DIM, dtype=jnp.float32)
    mean, std, value = jax.block_until_ready(
        fwd(state, fused_f32, ACTION_DIM, jnp.float32))

    ref_mean, ref_std, ref_value = ppo_network_reference(state, params)
    assert mean.shape == (B, ACTION_DIM)
    assert std.shape == (B, ACTION_DIM)
    assert value.shape == (B, 1)
    assert jnp.allclose(mean, ref_mean, atol=1e-5, rtol=1e-5)
    assert jnp.allclose(std, ref_std, atol=1e-5, rtol=1e-5)
    assert jnp.allclose(value, ref_value, atol=1e-5, rtol=1e-5)
    assert bool(jnp.all(std > 0.0))

    # ---- bf16 MXU path at a larger batch (2-block grid -> v7x megacore) ----
    B2 = 64
    state2 = jax.random.normal(k_state2, (B2, STATE_DIM), jnp.float32)
    fused_bf16 = fuse_params(params, ACTION_DIM, dtype=jnp.bfloat16)
    mean2, std2, value2 = jax.block_until_ready(
        fwd(state2, fused_bf16, ACTION_DIM, jnp.bfloat16))

    rm2, rs2, rv2 = ppo_network_reference(state2, params)
    assert mean2.shape == (B2, ACTION_DIM)
    assert std2.shape == (B2, ACTION_DIM)
    assert value2.shape == (B2, 1)
    assert jnp.allclose(mean2, rm2, atol=1e-1, rtol=1e-1)   # bf16 inputs/weights
    assert jnp.allclose(std2, rs2, atol=1e-1, rtol=1e-1)
    assert jnp.allclose(value2, rv2, atol=1e-1, rtol=1e-1)
    assert bool(jnp.all(std2 > 0.0))

    print("KERNEL_OK")
</pallas_src>

<mosaic_0001>
module attributes {stable_mosaic.version = 11 : i64} {
  func.func @_ppo_fused_kernel(%arg0: i32, %arg1: memref<8x16xf32, #tpu.memory_space<vmem>>, %arg2: memref<16x256xf32, #tpu.memory_space<vmem>>, %arg3: memref<1x256xf32, #tpu.memory_space<vmem>>, %arg4: memref<256x128xf32, #tpu.memory_space<vmem>>, %arg5: memref<1x128xf32, #tpu.memory_space<vmem>>, %arg6: memref<128x128xf32, #tpu.memory_space<vmem>>, %arg7: memref<1x128xf32, #tpu.memory_space<vmem>>, %arg8: memref<8x128xf32, #tpu.memory_space<vmem>>) attributes {dimension_semantics = [#tpu.dimension_semantics<parallel>], iteration_bounds = array<i64: 1>, scalar_prefetch = 0 : i64, scratch_operands = 0 : i64, tpu.core_type = #tpu.core_type<tc>, window_params = [{transform_indices = @transform_0, window_bounds = array<i64: 8, 16>}, {pipeline_mode = #tpu.pipeline_mode<synchronous>, transform_indices = @transform_1, window_bounds = array<i64: 16, 256>}, {pipeline_mode = #tpu.pipeline_mode<synchronous>, transform_indices = @transform_2, window_bounds = array<i64: 1, 256>}, {pipeline_mode = #tpu.pipeline_mode<synchronous>, transform_indices = @transform_3, window_bounds = array<i64: 256, 128>}, {pipeline_mode = #tpu.pipeline_mode<synchronous>, transform_indices = @transform_4, window_bounds = array<i64: 1, 128>}, {pipeline_mode = #tpu.pipeline_mode<synchronous>, transform_indices = @transform_5, window_bounds = array<i64: 128, 128>}, {pipeline_mode = #tpu.pipeline_mode<synchronous>, transform_indices = @transform_6, window_bounds = array<i64: 1, 128>}, {transform_indices = @transform_7, window_bounds = array<i64: 8, 128>}]} {
    %c0 = arith.constant 0 : index
    %c0_0 = arith.constant 0 : index
    %0 = vector.load %arg1[%c0, %c0_0] : memref<8x16xf32, #tpu.memory_space<vmem>>, vector<8x16xf32>
    %c0_1 = arith.constant 0 : index
    %c0_2 = arith.constant 0 : index
    %1 = vector.load %arg2[%c0_1, %c0_2] : memref<16x256xf32, #tpu.memory_space<vmem>>, vector<16x256xf32>
    %cst = arith.constant dense<0.000000e+00> : vector<8x256xf32>
    %2 = tpu.matmul %0, %1, %cst {dimension_numbers = #tpu.dot_dimension_numbers<[1], [0], [0], [1], [0, 0, 1, 1], [], []>} : vector<8x16xf32>, vector<16x256xf32>, vector<8x256xf32> -> vector<8x256xf32>
    %c0_3 = arith.constant 0 : index
    %c0_4 = arith.constant 0 : index
    %3 = vector.load %arg3[%c0_3, %c0_4] : memref<1x256xf32, #tpu.memory_space<vmem>>, vector<1x256xf32>
    %4 = vector.broadcast %3 : vector<1x256xf32> to vector<8x256xf32>
    %5 = arith.addf %2, %4 : vector<8x256xf32>
    %cst_5 = arith.constant 0.000000e+00 : f32
    %6 = vector.broadcast %cst_5 : f32 to vector<8x256xf32>
    %7 = arith.maximumf %5, %6 : vector<8x256xf32>
    %c0_6 = arith.constant 0 : index
    %c0_7 = arith.constant 0 : index
    %8 = vector.load %arg4[%c0_6, %c0_7] : memref<256x128xf32, #tpu.memory_space<vmem>>, vector<256x128xf32>
    %cst_8 = arith.constant dense<0.000000e+00> : vector<8x128xf32>
    %9 = tpu.matmul %7, %8, %cst_8 {dimension_numbers = #tpu.dot_dimension_numbers<[1], [0], [0], [1], [0, 0, 1, 1], [], []>} : vector<8x256xf32>, vector<256x128xf32>, vector<8x128xf32> -> vector<8x128xf32>
    %c0_9 = arith.constant 0 : index
    %c0_10 = arith.constant 0 : index
    %10 = vector.load %arg5[%c0_9, %c0_10] : memref<1x128xf32, #tpu.memory_space<vmem>>, vector<1x128xf32>
    %11 = vector.broadcast %10 : vector<1x128xf32> to vector<8x128xf32>
    %12 = arith.addf %9, %11 : vector<8x128xf32>
    %cst_11 = arith.constant 0.000000e+00 : f32
    %13 = vector.broadcast %cst_11 : f32 to vector<8x128xf32>
    %14 = arith.maximumf %12, %13 : vector<8x128xf32>
    %c0_12 = arith.constant 0 : index
    %c0_13 = arith.constant 0 : index
    %15 = vector.load %arg6[%c0_12, %c0_13] : memref<128x128xf32, #tpu.memory_space<vmem>>, vector<128x128xf32>
    %cst_14 = arith.constant dense<0.000000e+00> : vector<8x128xf32>
    %16 = tpu.matmul %14, %15, %cst_14 {dimension_numbers = #tpu.dot_dimension_numbers<[1], [0], [0], [1], [0, 0, 1, 1], [], []>} : vector<8x128xf32>, vector<128x128xf32>, vector<8x128xf32> -> vector<8x128xf32>
    %c0_15 = arith.constant 0 : index
    %c0_16 = arith.constant 0 : index
    %17 = vector.load %arg7[%c0_15, %c0_16] : memref<1x128xf32, #tpu.memory_space<vmem>>, vector<1x128xf32>
    %18 = vector.broadcast %17 : vector<1x128xf32> to vector<8x128xf32>
    %19 = arith.addf %16, %18 : vector<8x128xf32>
    %c0_17 = arith.constant 0 : index
    %c0_18 = arith.constant 0 : index
    %20 = vector.load %arg8[%c0_17, %c0_18] : memref<8x128xf32, #tpu.memory_space<vmem>>, vector<8x128xf32>
    tpu.vector_store %arg8[%c0_17, %c0_18], %19 {strides = array<i32>} : memref<8x128xf32, #tpu.memory_space<vmem>>, vector<8x128xf32>,
    return
  }
  func.func @transform_0(%arg0: i32) -> (i32, i32) {
    %c0_i32 = arith.constant 0 : i32
    %c0_i32_0 = arith.constant 0 : i32
    return %arg0, %c0_i32 : i32, i32
  }
  func.func @transform_1(%arg0: i32) -> (i32, i32) {
    %c0_i32 = arith.constant 0 : i32
    %c0_i32_0 = arith.constant 0 : i32
    %c0_i32_1 = arith.constant 0 : i32
    return %c0_i32, %c0_i32_0 : i32, i32
  }
  func.func @transform_2(%arg0: i32) -> (i32, i32) {
    %c0_i32 = arith.constant 0 : i32
    %c0_i32_0 = arith.constant 0 : i32
    %c0_i32_1 = arith.constant 0 : i32
    return %c0_i32, %c0_i32_0 : i32, i32
  }
  func.func @transform_3(%arg0: i32) -> (i32, i32) {
    %c0_i32 = arith.constant 0 : i32
    %c0_i32_0 = arith.constant 0 : i32
    %c0_i32_1 = arith.constant 0 : i32
    return %c0_i32, %c0_i32_0 : i32, i32
  }
  func.func @transform_4(%arg0: i32) -> (i32, i32) {
    %c0_i32 = arith.constant 0 : i32
    %c0_i32_0 = arith.constant 0 : i32
    %c0_i32_1 = arith.constant 0 : i32
    return %c0_i32, %c0_i32_0 : i32, i32
  }
  func.func @transform_5(%arg0: i32) -> (i32, i32) {
    %c0_i32 = arith.constant 0 : i32
    %c0_i32_0 = arith.constant 0 : i32
    %c0_i32_1 = arith.constant 0 : i32
    return %c0_i32, %c0_i32_0 : i32, i32
  }
  func.func @transform_6(%arg0: i32) -> (i32, i32) {
    %c0_i32 = arith.constant 0 : i32
    %c0_i32_0 = arith.constant 0 : i32
    %c0_i32_1 = arith.constant 0 : i32
    return %c0_i32, %c0_i32_0 : i32, i32
  }
  func.func @transform_7(%arg0: i32) -> (i32, i32) {
    %c0_i32 = arith.constant 0 : i32
    %c0_i32_0 = arith.constant 0 : i32
    return %arg0, %c0_i32 : i32, i32
  }
}

</mosaic_0001>

<bundles_post_ra>
// kernel: ppo_network_forward.1
= control target key start
LH: loop header
LB: loop body
LE: loop exit
PB: predicated region body
PF: predicated region fallthrough
CT: control target
= control target key end

     0   :  { %12 = vsyncpa [#allocation3], 0  ;;  %s701_s0 = inlined_call_operand.hbm [shape: f32[8,16], index: 0, kind: input, shape index: {}]   ;;  %s702_s1 = inlined_call_operand.hbm [shape: f32[16,256], index: 1, kind: input, shape index: {}]   ;;  %s703_s2 = inlined_call_operand.hbm [shape: f32[1,256], index: 2, kind: input, shape index: {}]   ;;  %s704_s3 = inlined_call_operand.hbm [shape: f32[256,128], index: 3, kind: input, shape index: {}]   ;;  %s705_s4 = inlined_call_operand.vmem [shape: f32[1,128], index: 4, kind: input, shape index: {}]   ;;  %s706_s5 = inlined_call_operand.hbm [shape: f32[128,128], index: 5, kind: input, shape index: {}]   ;;  %s707_s6 = inlined_call_operand.vmem [shape: f32[1,128], index: 6, kind: input, shape index: {}]   ;;  %s708_s7 = inlined_call_operand.vmem [shape: f32[8,128], index: 7, kind: output, shape index: {}]  }
   0x1   :  { %13 = vsyncpa [#allocation5], 0 }
   0x2   :  { %14 = vsyncpa [#allocation8], 0  ;;  %s602_s24 = smov [#allocation4]  }
   0x3   :  { %s30_s25 = sshll.u32 %s602_s24, 4  ;;  %s31_s25 = int_to_ptr.vmem [resolvable:$true] %s30_s25 }
   0x4   :  { %s504_s26 = scalar_lea.vmem %s31_s25, 512  ;;  %p509_p1 = scmp.lt.s32.totalorder %s31_s25, %s31_s25 }
   0x5   :  { %p505_p0 = scmp.ne.s32.totalorder %s31_s25, %s504_s26  ;;  %p510_p2 = scmp.lt.s32.totalorder %s504_s26, %s504_s26 }
   0x7   :  { %p511_p3 = por %p510_p2, %p509_p1 }
   0x9   :  { %p512_p4 = pnand %p511_p3, %p505_p0 }
   0xb   :  { %515 = shalt.err (!%p512_p4)
}
   0xc   :  { %s603_s27 = smov 256   ;;  %s604_s28 = smov 16  }
   0xd   :  { %36 = dma.hbm_to_vmem [thread:$0]  %s702_s1, 512, %s31_s25, [#allocation5], %s603_s27, %s603_s27, %s604_s28  }
   0xe   :  { %s605_s8 = smov [#allocation7]  }
   0xf   :  { %s52_s9 = sshll.u32 %s605_s8, 4  ;;  %s53_s9 = int_to_ptr.vmem [resolvable:$true] %s52_s9 }
  0x10   :  { %s524_s10 = scalar_lea.vmem %s53_s9, 4096  ;;  %p529_p6 = scmp.lt.s32.totalorder %s53_s9, %s53_s9 }
  0x11   :  { %p525_p5 = scmp.ne.s32.totalorder %s53_s9, %s524_s10  ;;  %p530_p7 = scmp.lt.s32.totalorder %s524_s10, %s524_s10 }
  0x13   :  { %p531_p8 = por %p530_p7, %p529_p6 }
  0x15   :  { %p532_p9 = pnand %p531_p8, %p525_p5 }
  0x17   :  { %535 = shalt.err (!%p532_p9)
}
  0x18   :  { %s606_s11 = smov 128   ;;  %s607_s12 = smov 8  }
  0x19   :  { %58 = dma.hbm_to_vmem [thread:$0]  %s704_s3, 4096, %s53_s9, [#allocation8], %s606_s11, %s606_s11, %s607_s12  }
  0x1a   :  { %s608_s1 = smov [#allocation2]   ;;  %s609_s16 = smov [#allocation6]  }
  0x1b   :  { %s21_s15 = sshll.u32 %s608_s1, 4  ;;  %s43_s17 = sshll.u32 %s609_s16, 4  ;;  %s22_s15 = int_to_ptr.vmem [resolvable:$true] %s21_s15  ;;  %s44_s17 = int_to_ptr.vmem [resolvable:$true] %s43_s17 }
  0x1c   :  { %s544_s18 = scalar_lea.vmem %s22_s15, 128  ;;  %p549_p11 = scmp.lt.s32.totalorder %s22_s15, %s22_s15 }
  0x1d   :  { %p545_p10 = scmp.ne.s32.totalorder %s22_s15, %s544_s18  ;;  %p550_p12 = scmp.lt.s32.totalorder %s544_s18, %s544_s18 }
  0x1f   :  { %p551_p13 = por %p550_p12, %p549_p11 }
  0x21   :  { %p552_p0 = pnand %p551_p13, %p545_p10 }
  0x23   :  { %555 = shalt.err (!%p552_p0)
}
  0x24   :  { %24 = dma.hbm_to_vmem [thread:$0]  %s701_s0, 128, %s22_s15, [#allocation3]  }
  0x25   :  { %s564_s21 = scalar_lea.vmem %s44_s17, 32  ;;  %p569_p2 = scmp.lt.s32.totalorder %s44_s17, %s44_s17 }
  0x26   :  { %p565_p1 = scmp.ne.s32.totalorder %s44_s17, %s564_s21  ;;  %p570_p3 = scmp.lt.s32.totalorder %s564_s21, %s564_s21 }
  0x28   :  { %p571_p4 = por %p570_p3, %p569_p2 }
  0x2a   :  { %p572_p5 = pnand %p571_p4, %p565_p1 }
  0x2c   :  { %575 = shalt.err (!%p572_p5)
}
  0x2d   :  { %46 = dma.hbm_to_vmem [thread:$0]  %s703_s2, 32, %s44_s17, [#allocation5]  }
  0x2e   :  { %s610_s23 = smov [#allocation9]  }
  0x2f   :  { %s66_s24 = sshll.u32 %s610_s23, 4  ;;  %s67_s24 = int_to_ptr.vmem [resolvable:$true] %s66_s24 }
  0x30   :  { %s584_s25 = scalar_lea.vmem %s67_s24, 2048  ;;  %p589_p7 = scmp.lt.s32.totalorder %s67_s24, %s67_s24 }
  0x31   :  { %p585_p6 = scmp.ne.s32.totalorder %s67_s24, %s584_s25  ;;  %p590_p8 = scmp.lt.s32.totalorder %s584_s25, %s584_s25 }
  0x33   :  { %p591_p9 = por %p590_p8, %p589_p7 }
  0x35   :  { %p592_p10 = pnand %p591_p9, %p585_p6 }
  0x37   :  { %595 = shalt.err (!%p592_p10)
}
  0x38   :  { %72 = dma.hbm_to_vmem [thread:$0]  %s706_s5, 2048, %s67_s24, [#allocation8], %s606_s11, %s606_s11, %s607_s12  }
  0x39   :  { %596 = dma.done.wait [#allocation3], 128  }
  0x3a   :  { %597 = vsyncadd [#allocation3], 4294967168 }
  0x3b   :  { %598 = dma.done.wait [#allocation5], 544  }
  0x3c   :  { %599 = vsyncadd [#allocation5], 4294966752 }
  0x3d   :  { %600 = dma.done.wait [#allocation8], 6144  }
  0x3e   :  { %601 = vsyncadd [#allocation8], 4294961152  ;;  %v611_v0 = vmov 0.0   ;;  %v94_v1 = vld [vmem:[#allocation4 + $0x18] sm:$0xff]  ;;  %v93_v2 = vld [vmem:[#allocation4 + $0x10] sm:$0xff]  ;;  %vm107_vm0 = vcmask 130048   ;;  %v97_v49 = vlaneseq }
  0x3f   :  { %175 = vmatprep.mubr.f32.mxu0 %v611_v0  ;;  %v92_v3 = vld [vmem:[#allocation4 + $0x8] sm:$0xff]  ;;  %139 = vmatprep.subr.mxu0 %v94_v1  ;;  %v91_v4 = vld [vmem:[#allocation4] sm:$0xff]  ;;  %v90_v5 = vld [vmem:[#allocation2] sm:$0xff]  ;;  %vm612_vm1 = vmmov 0  }
  0x40   :  { %v215_v6 = vld [vmem:[#allocation7 + $0xf8] sm:$0xff]  ;;  %140 = vmatpush1.msra.mxu0 %v93_v2  ;;  %v214_v8 = vld [vmem:[#allocation7 + $0xf0] sm:$0xff]  ;;  %v213_v10 = vld [vmem:[#allocation7 + $0xe8] sm:$0xff]  ;;  %v98_v50 = vshrl.u32 %v97_v49, 7 }
  0x41   :  { %398 = vmatprep.subr.mxu1 %v215_v6  ;;  %v199_v7 = vld [vmem:[#allocation7 + $0x78] sm:$0xff]  ;;  %v198_v9 = vld [vmem:[#allocation7 + $0x70] sm:$0xff]  ;;  %141 = vmatprep.subr.mxu0 %v92_v3  ;;  %v197_v11 = vld [vmem:[#allocation7 + $0x68] sm:$0xff] }
  0x42   :  { %399 = vmatpush3.msra.mxu1 %v199_v7  ;;  %142 = vmatpush1.msra.mxu0 %v91_v4  ;;  %v212_v12 = vld [vmem:[#allocation7 + $0xe0] sm:$0xff]  ;;  %v211_v14 = vld [vmem:[#allocation7 + $0xd8] sm:$0xff]  ;;  %v210_v16 = vld [vmem:[#allocation7 + $0xd0] sm:$0xff]  ;;  %v99_v51 = vsub.s32 0, %v98_v50  ;;  %v103_v53 = vsub.s32 1, %v98_v50 }
  0x43   :  { %400 = vmatprep.subr.mxu1 %v214_v8  ;;  %395 = vmatmul.mubr.msk.f32.vlgmr.msra.gmra.mxu0 %vm107_vm0, %v90_v5  ;;  %v196_v13 = vld [vmem:[#allocation7 + $0x60] sm:$0xff]  ;;  %v195_v15 = vld [vmem:[#allocation7 + $0x58] sm:$0xff]  ;;  %v194_v17 = vld [vmem:[#allocation7 + $0x50] sm:$0xff] }
  0x44   :  { %401 = vmatpush3.msra.mxu1 %v198_v9  ;;  %450 = vmatprep.subr.mxu0 %v611_v0  ;;  %v209_v18 = vld [vmem:[#allocation7 + $0xc8] sm:$0xff]  ;;  %v208_v20 = vld [vmem:[#allocation7 + $0xc0] sm:$0xff]  ;;  %v207_v22 = vld [vmem:[#allocation7 + $0xb8] sm:$0xff] }
  0x45   :  { %402 = vmatprep.subr.mxu1 %v213_v10  ;;  %v193_v19 = vld [vmem:[#allocation7 + $0x48] sm:$0xff]  ;;  %v192_v21 = vld [vmem:[#allocation7 + $0x40] sm:$0xff]  ;;  %v191_v23 = vld [vmem:[#allocation7 + $0x38] sm:$0xff]  ;;  %482 = vmatprep.mubr.msk.f32.mxu0 %vm612_vm1, %v611_v0 }
  0x46   :  { %403 = vmatpush3.msra.mxu1 %v197_v11  ;;  %v206_v24 = vld [vmem:[#allocation7 + $0xb0] sm:$0xff]  ;;  %v205_v26 = vld [vmem:[#allocation7 + $0xa8] sm:$0xff]  ;;  %v204_v28 = vld [vmem:[#allocation7 + $0xa0] sm:$0xff] }
  0x47   :  { %404 = vmatprep.subr.mxu1 %v212_v12  ;;  %v190_v25 = vld [vmem:[#allocation7 + $0x30] sm:$0xff]  ;;  %v189_v27 = vld [vmem:[#allocation7 + $0x28] sm:$0xff]  ;;  %v188_v29 = vld [vmem:[#allocation7 + $0x20] sm:$0xff] }
  0x48   :  { %405 = vmatpush3.msra.mxu1 %v196_v13  ;;  %v203_v30 = vld [vmem:[#allocation7 + $0x98] sm:$0xff]  ;;  %v202_v32 = vld [vmem:[#allocation7 + $0x90] sm:$0xff]  ;;  %v201_v34 = vld [vmem:[#allocation7 + $0x88] sm:$0xff] }
  0x49   :  { %406 = vmatprep.subr.mxu1 %v211_v14  ;;  %v187_v31 = vld [vmem:[#allocation7 + $0x18] sm:$0xff]  ;;  %v186_v33 = vld [vmem:[#allocation7 + $0x10] sm:$0xff]  ;;  %v185_v35 = vld [vmem:[#allocation7 + $0x8] sm:$0xff] }
  0x4a   :  { %407 = vmatpush3.msra.mxu1 %v195_v15  ;;  %v200_v36 = vld [vmem:[#allocation7 + $0x80] sm:$0xff]  ;;  %v309_v38 = vld [vmem:[#allocation9 + $0x78] sm:$0xff]  ;;  %v308_v39 = vld [vmem:[#allocation9 + $0x70] sm:$0xff] }
  0x4b   :  { %408 = vmatprep.subr.mxu1 %v210_v16  ;;  %v184_v37 = vld [vmem:[#allocation7] sm:$0xff]  ;;  %451 = vmatpush3.msra.mxu0 %v309_v38  ;;  %v307_v40 = vld [vmem:[#allocation9 + $0x68] sm:$0xff]  ;;  %v305_v42 = vld [vmem:[#allocation9 + $0x58] sm:$0xff] }
  0x4c   :  { %409 = vmatpush3.msra.mxu1 %v194_v17  ;;  %452 = vmatprep.subr.mxu0 %v611_v0  ;;  %v306_v41 = vld [vmem:[#allocation9 + $0x60] sm:$0xff]  ;;  %v304_v43 = vld [vmem:[#allocation9 + $0x50] sm:$0xff]  ;;  %v303_v44 = vld [vmem:[#allocation9 + $0x48] sm:$0xff] }
  0x4d   :  { %410 = vmatprep.subr.mxu1 %v209_v18  ;;  %453 = vmatpush3.msra.mxu0 %v308_v39  ;;  %v302_v45 = vld [vmem:[#allocation9 + $0x40] sm:$0xff]  ;;  %v301_v46 = vld [vmem:[#allocation9 + $0x38] sm:$0xff]  ;;  %v300_v47 = vld [vmem:[#allocation9 + $0x30] sm:$0xff] }
  0x4e   :  { %411 = vmatpush3.msra.mxu1 %v193_v19  ;;  %454 = vmatprep.subr.mxu0 %v611_v0  ;;  %v299_v48 = vld [vmem:[#allocation9 + $0x28] sm:$0xff]  ;;  %v95_v52 = vld [vmem:[#allocation6] sm:$0x3]  ;;  %v298_v62 = vld [vmem:[#allocation9 + $0x20] sm:$0xff] }
  0x4f   :  { %412 = vmatprep.subr.mxu1 %v208_v20  ;;  %455 = vmatpush3.msra.mxu0 %v307_v40  ;;  %v100_v54 = vrot.slane %v95_v52, %v99_v51  ;;  %v104_v55 = vrot.slane %v95_v52, %v103_v53  ;;  %v297_v63 = vld [vmem:[#allocation9 + $0x18] sm:$0xff]  ;;  %v296_v1 = vld [vmem:[#allocation9 + $0x10] sm:$0xff]  ;;  %v295_v2 = vld [vmem:[#allocation9 + $0x8] sm:$0xff] }
  0x50   :  { %413 = vmatpush3.msra.mxu1 %v192_v21  ;;  %456 = vmatprep.subr.mxu0 %v611_v0  ;;  %v294_v3 = vld [vmem:[#allocation9] sm:$0xff]  ;;  %v396_v5 = vld [vmem:[%s705_s4] ss:$0 sm:$0xff] }
  0x51   :  { %414 = vmatprep.subr.mxu1 %v207_v22  ;;  %457 = vmatpush3.msra.mxu0 %v306_v41  ;;  %v397_v10 = vld [vmem:[%s707_s6] ss:$0 sm:$0xff] }
  0x52   :  { %415 = vmatpush3.msra.mxu1 %v191_v23  ;;  %458 = vmatprep.subr.mxu0 %v611_v0 }
  0x53   :  { %416 = vmatprep.subr.mxu1 %v206_v24  ;;  %459 = vmatpush3.msra.mxu0 %v305_v42 }
  0x54   :  { %417 = vmatpush3.msra.mxu1 %v190_v25  ;;  %460 = vmatprep.subr.mxu0 %v611_v0 }
  0x55   :  { %418 = vmatprep.subr.mxu1 %v205_v26  ;;  %461 = vmatpush3.msra.mxu0 %v304_v43 }
  0x56   :  { %419 = vmatpush3.msra.mxu1 %v189_v27  ;;  %462 = vmatprep.subr.mxu0 %v611_v0 }
  0x57   :  { %420 = vmatprep.subr.mxu1 %v204_v28  ;;  %463 = vmatpush3.msra.mxu0 %v303_v44 }
  0x58   :  { %421 = vmatpush3.msra.mxu1 %v188_v29  ;;  %464 = vmatprep.subr.mxu0 %v611_v0 }
  0x59   :  { %422 = vmatprep.subr.mxu1 %v203_v30  ;;  %465 = vmatpush3.msra.mxu0 %v302_v45 }
  0x5a   :  { %423 = vmatpush3.msra.mxu1 %v187_v31  ;;  %466 = vmatprep.subr.mxu0 %v611_v0 }
  0x5b   :  { %424 = vmatprep.subr.mxu1 %v202_v32  ;;  %467 = vmatpush3.msra.mxu0 %v301_v46 }
  0x5c   :  { %425 = vmatpush3.msra.mxu1 %v186_v33  ;;  %468 = vmatprep.subr.mxu0 %v611_v0 }
  0x5d   :  { %426 = vmatprep.subr.mxu1 %v201_v34  ;;  %469 = vmatpush3.msra.mxu0 %v300_v47 }
  0x5e   :  { %427 = vmatpush3.msra.mxu1 %v185_v35  ;;  %470 = vmatprep.subr.mxu0 %v611_v0 }
  0x5f   :  { %428 = vmatprep.subr.mxu1 %v200_v36  ;;  %471 = vmatpush3.msra.mxu0 %v299_v48 }
  0x60   :  { %429 = vmatpush3.msra.mxu1 %v184_v37  ;;  %472 = vmatprep.subr.mxu0 %v611_v0 }
  0x61   :  { %473 = vmatpush3.msra.mxu0 %v298_v62 }
  0x62   :  { %474 = vmatprep.subr.mxu0 %v611_v0 }
  0x63   :  { %475 = vmatpush3.msra.mxu0 %v297_v63 }
  0x64   :  { %476 = vmatprep.subr.mxu0 %v611_v0 }
  0x65   :  { %477 = vmatpush3.msra.mxu0 %v296_v1 }
  0x66   :  { %478 = vmatprep.subr.mxu0 %v611_v0 }
  0x67   :  { %479 = vmatpush3.msra.mxu0 %v295_v2 }
  0x68   :  { %480 = vmatprep.subr.mxu0 %v611_v0 }
  0x69   :  { %481 = vmatpush3.msra.mxu0 %v294_v3 }
 0x103   :  { %v177_v56 = vpop.f32.mrf.mxu0 }
 0x104   :  { %v178_v57 = vadd.f32 %v177_v56, %v100_v54 }
 0x105   :  { %v179_v58 = vpop.f32.mrf.mxu0 }
 0x106   :  { %v180_v59 = vadd.f32 %v179_v58, %v104_v55  ;;  %v182_v61 = vmax.f32 %v178_v57, 0.0 }
 0x108   :  { %v183_v60 = vmax.f32 %v180_v59, 0.0 }
 0x10a   :  { %287 = vmatprep.mubr.f32.mxu1 %v183_v60 }
 0x10b   :  { %288 = vmatmul.mubr.f32.vlgmr.msra.gmra.mxu1 %v182_v61 }
 0x1cb   :  { %v430_v4 = vpop.f32.mrf.mxu1 }
 0x1cd   :  { %v431_v6 = vpop.f32.mrf.mxu1 }
 0x1ce   :  { %v432_v7 = vadd.f32 %v431_v6, %v430_v4 }
 0x1d0   :  { %v290_v8 = vadd.f32 %v432_v7, %v396_v5 }
 0x1d2   :  { %v293_v9 = vmax.f32 %v290_v8, 0.0 }
 0x1d4   :  { %483 = vmatmul.mubr.f32.vlgmr.msra.gmra.mxu0 %v293_v9 }
 0x294   :  { %v383_v11 = vpop.f32.mrf.mxu0 }
 0x295   :  { %v384_v12 = vadd.f32 %v397_v10, %v383_v11 }
 0x296   :  { %v484_v13 = vpop.f32.mrf.mxu0 }
 0x297   :  { %387 = vst [vmem:[%s708_s7] sm:$0xff] %v384_v12 }
 0x298   :  { %392 = vsyncpa [#allocation3], 1 }
 0x299   :  { %393 = vsyncpa [#allocation5], 1 }
 0x29a   :  { %394 = vsyncpa [#allocation8], 1 }

</bundles_post_ra>
